<compile_context>
chip_gen: v7x
topology: tpu7x:2x2x1
jax: 0.10.0
libtpu: 0.0.40
codegen_flags: <defaults>
</compile_context>

<pallas_src>
import jax
import jax.numpy as jnp
from jax.experimental import pallas as pl
from jax.experimental.pallas import tpu as pltpu


def discriminator_kernel(x_ref, w1_ref, b1_ref, w2_ref, b2_ref, o_ref, acc_ref):
    k = pl.program_id(0)

    # Init the fc1 accumulator on the first K-chunk.
    @pl.when(k == 0)
    def _init():
        acc_ref[...] = jnp.zeros_like(acc_ref)

    # fc1 partial: [B, tk](bf16) @ [tk, H](bf16) -> f32 accumulate.
    acc_ref[...] += jnp.dot(
        x_ref[...], w1_ref[...], preferred_element_type=jnp.float32
    )

    # On the last K-chunk: bias + ReLU (f32), then fc2 into a lane-dense block.
    @pl.when(k == pl.num_programs(0) - 1)
    def _finalize():
        h = jnp.maximum(acc_ref[...] + b1_ref[...], 0.0)          # f32
        out = jnp.dot(
            h.astype(w2_ref.dtype), w2_ref[...],
            preferred_element_type=jnp.float32,
        )
        o_ref[...] = (out + b2_ref[...]).astype(o_ref.dtype)


def discriminator_forward(x, w1, b1, w2, b2, *, tk=256, lane_pad=128):
    """x: [B, D], w1: [D, H], b1: [1, H], w2: [H, C], b2: [1, C] -> [B, C] (f32)."""
    B, D = x.shape
    H = w1.shape[1]
    C = w2.shape[1]
    assert D % tk == 0, "reduction dim must be divisible by the K-tile"
    assert C <= lane_pad

    # bf16 MXU inputs (f32 accumulation happens in-kernel).
    x_bf = x.astype(jnp.bfloat16)
    w1_bf = w1.astype(jnp.bfloat16)
    w2_bf = w2.astype(jnp.bfloat16)

    # Lane-dense padding of the fc2 output path: C -> lane_pad columns.
    Cp = lane_pad
    w2_p = jnp.zeros((H, Cp), jnp.bfloat16).at[:, :C].set(w2_bf)
    b2_p = jnp.zeros((1, Cp), jnp.float32).at[:, :C].set(b2.astype(jnp.float32))
    b1_f = b1.astype(jnp.float32)

    nk = D // tk
    bytes_accessed = (
        B * D * 2          # x (bf16)
        + D * H * 2        # w1 (bf16)
        + H * Cp * 2       # w2 padded (bf16)
        + H * 4 + Cp * 4   # biases (f32)
        + B * Cp * 4       # output (f32)
    )

    out_padded = pl.pallas_call(
        discriminator_kernel,
        out_shape=jax.ShapeDtypeStruct((B, Cp), jnp.float32),
        grid=(nk,),
        in_specs=[
            pl.BlockSpec((B, tk), lambda k: (0, k)),    # x K-chunk
            pl.BlockSpec((tk, H), lambda k: (k, 0)),    # w1 K-chunk (pipelined)
            pl.BlockSpec((1, H), lambda k: (0, 0)),     # b1 (resident)
            pl.BlockSpec((H, Cp), lambda k: (0, 0)),    # w2 padded (resident)
            pl.BlockSpec((1, Cp), lambda k: (0, 0)),    # b2 padded (resident)
        ],
        out_specs=pl.BlockSpec((B, Cp), lambda k: (0, 0)),
        scratch_shapes=[pltpu.VMEM((B, H), jnp.float32)],
        compiler_params=pltpu.CompilerParams(
            dimension_semantics=("arbitrary",),   # K is a reduction axis
        ),
        cost_estimate=pl.CostEstimate(
            flops=2 * B * D * H + 2 * B * H * Cp,
            transcendentals=0,
            bytes_accessed=bytes_accessed,
        ),
    )(x_bf, w1_bf, b1_f, w2_p, b2_p)

    # TODO(synk): for large batches, add a "parallel" batch grid axis so weights
    # stay VMEM-resident across batch tiles (and both v7x TensorCores are used).
    return out_padded[:, :C]


def init_params(key, input_size, hidden_size, num_classes):
    """Deterministic init mimicking PyTorch's nn.Linear default (uniform +/- 1/sqrt(fan_in))."""
    k1, k2, k3, k4 = jax.random.split(key, 4)
    bound1 = 1.0 / (input_size ** 0.5)
    bound2 = 1.0 / (hidden_size ** 0.5)
    w1 = jax.random.uniform(k1, (input_size, hidden_size), jnp.float32, -bound1, bound1)
    b1 = jax.random.uniform(k2, (1, hidden_size), jnp.float32, -bound1, bound1)
    w2 = jax.random.uniform(k3, (hidden_size, num_classes), jnp.float32, -bound2, bound2)
    b2 = jax.random.uniform(k4, (1, num_classes), jnp.float32, -bound2, bound2)
    return w1, b1, w2, b2


if __name__ == "__main__":
    # Module defaults: input_size=1024, hidden_size=512, num_classes=3. Small batch.
    B, D, H, C = 8, 1024, 512, 3

    key = jax.random.PRNGKey(0)
    kx, kp = jax.random.split(key)
    x = jax.random.normal(kx, (B, D), jnp.float32)
    w1, b1, w2, b2 = init_params(kp, D, H, C)

    out = discriminator_forward(x, w1, b1, w2, b2)
    out = jax.block_until_ready(out)

    # Reference in plain JAX using the same bf16-quantized matmul inputs the
    # kernel sees (f32 accumulate), so the comparison is tight.
    xq = x.astype(jnp.bfloat16).astype(jnp.float32)
    w1q = w1.astype(jnp.bfloat16).astype(jnp.float32)
    w2q = w2.astype(jnp.bfloat16).astype(jnp.float32)
    h_ref = jnp.maximum(xq @ w1q + b1, 0.0)
    ref = h_ref.astype(jnp.bfloat16).astype(jnp.float32) @ w2q + b2

    assert out.shape == (B, C)
    assert jnp.allclose(out, ref, atol=2e-2, rtol=2e-2), (
        float(jnp.max(jnp.abs(out - ref)))
    )

    # Sanity vs the full-f32 PyTorch-equivalent math (loose tol for bf16 weights).
    ref_f32 = jnp.maximum(x @ w1 + b1, 0.0) @ w2 + b2
    assert jnp.allclose(out, ref_f32, atol=5e-2, rtol=5e-2)

    print("KERNEL_OK")
</pallas_src>

<mosaic_0001>
module attributes {stable_mosaic.version = 11 : i64} {
  func.func @discriminator_kernel(%arg0: i32, %arg1: memref<8x256xbf16, #tpu.memory_space<vmem>>, %arg2: memref<256x512xbf16, #tpu.memory_space<vmem>>, %arg3: memref<1x512xf32, #tpu.memory_space<vmem>>, %arg4: memref<512x128xbf16, #tpu.memory_space<vmem>>, %arg5: memref<1x128xf32, #tpu.memory_space<vmem>>, %arg6: memref<8x128xf32, #tpu.memory_space<vmem>>, %arg7: memref<8x512xf32, #tpu.memory_space<vmem>>) attributes {dimension_semantics = [#tpu.dimension_semantics<arbitrary>], iteration_bounds = array<i64: 4>, scalar_prefetch = 0 : i64, scratch_operands = 1 : i64, tpu.core_type = #tpu.core_type<tc>, window_params = [{transform_indices = @transform_0, window_bounds = array<i64: 8, 256>}, {transform_indices = @transform_1, window_bounds = array<i64: 256, 512>}, {pipeline_mode = #tpu.pipeline_mode<synchronous>, transform_indices = @transform_2, window_bounds = array<i64: 1, 512>}, {pipeline_mode = #tpu.pipeline_mode<synchronous>, transform_indices = @transform_3, window_bounds = array<i64: 512, 128>}, {pipeline_mode = #tpu.pipeline_mode<synchronous>, transform_indices = @transform_4, window_bounds = array<i64: 1, 128>}, {pipeline_mode = #tpu.pipeline_mode<synchronous>, transform_indices = @transform_5, window_bounds = array<i64: 8, 128>}]} {
    %c0_i32 = arith.constant 0 : i32
    %0 = arith.cmpi eq, %arg0, %c0_i32 : i32
    %1 = arith.extui %0 : i1 to i32
    %c0_i32_0 = arith.constant 0 : i32
    %2 = arith.cmpi ne, %1, %c0_i32_0 : i32
    scf.if %2 {
      %cst_9 = arith.constant 0.000000e+00 : f32
      %12 = vector.broadcast %cst_9 : f32 to vector<8x512xf32>
      %c0_10 = arith.constant 0 : index
      %c0_11 = arith.constant 0 : index
      %13 = vector.load %arg7[%c0_10, %c0_11] : memref<8x512xf32, #tpu.memory_space<vmem>>, vector<8x512xf32>
      tpu.vector_store %arg7[%c0_10, %c0_11], %12 {strides = array<i32>} : memref<8x512xf32, #tpu.memory_space<vmem>>, vector<8x512xf32>,
    } else {
    }
    %c0 = arith.constant 0 : index
    %c0_1 = arith.constant 0 : index
    %3 = vector.load %arg7[%c0, %c0_1] : memref<8x512xf32, #tpu.memory_space<vmem>>, vector<8x512xf32>
    %c0_2 = arith.constant 0 : index
    %c0_3 = arith.constant 0 : index
    %4 = vector.load %arg1[%c0_2, %c0_3] : memref<8x256xbf16, #tpu.memory_space<vmem>>, vector<8x256xbf16>
    %c0_4 = arith.constant 0 : index
    %c0_5 = arith.constant 0 : index
    %5 = vector.load %arg2[%c0_4, %c0_5] : memref<256x512xbf16, #tpu.memory_space<vmem>>, vector<256x512xbf16>
    %cst = arith.constant dense<0.000000e+00> : vector<8x512xf32>
    %6 = tpu.matmul %4, %5, %cst {dimension_numbers = #tpu.dot_dimension_numbers<[1], [0], [0], [1], [0, 0, 1, 1], [], []>} : vector<8x256xbf16>, vector<256x512xbf16>, vector<8x512xf32> -> vector<8x512xf32>
    %7 = arith.addf %3, %6 : vector<8x512xf32>
    %c0_6 = arith.constant 0 : index
    %c0_7 = arith.constant 0 : index
    %8 = vector.load %arg7[%c0_6, %c0_7] : memref<8x512xf32, #tpu.memory_space<vmem>>, vector<8x512xf32>
    tpu.vector_store %arg7[%c0_6, %c0_7], %7 {strides = array<i32>} : memref<8x512xf32, #tpu.memory_space<vmem>>, vector<8x512xf32>,
    %c3_i32 = arith.constant 3 : i32
    %9 = arith.cmpi eq, %arg0, %c3_i32 : i32
    %10 = arith.extui %9 : i1 to i32
    %c0_i32_8 = arith.constant 0 : i32
    %11 = arith.cmpi ne, %10, %c0_i32_8 : i32
    scf.if %11 {
      %c0_9 = arith.constant 0 : index
      %c0_10 = arith.constant 0 : index
      %12 = vector.load %arg7[%c0_9, %c0_10] : memref<8x512xf32, #tpu.memory_space<vmem>>, vector<8x512xf32>
      %c0_11 = arith.constant 0 : index
      %c0_12 = arith.constant 0 : index
      %13 = vector.load %arg3[%c0_11, %c0_12] : memref<1x512xf32, #tpu.memory_space<vmem>>, vector<1x512xf32>
      %14 = vector.broadcast %13 : vector<1x512xf32> to vector<8x512xf32>
      %15 = arith.addf %12, %14 : vector<8x512xf32>
      %cst_13 = arith.constant 0.000000e+00 : f32
      %16 = vector.broadcast %cst_13 : f32 to vector<8x512xf32>
      %17 = arith.maximumf %15, %16 : vector<8x512xf32>
      %18 = arith.truncf %17 : vector<8x512xf32> to vector<8x512xbf16>
      %c0_14 = arith.constant 0 : index
      %c0_15 = arith.constant 0 : index
      %19 = vector.load %arg4[%c0_14, %c0_15] : memref<512x128xbf16, #tpu.memory_space<vmem>>, vector<512x128xbf16>
      %cst_16 = arith.constant dense<0.000000e+00> : vector<8x128xf32>
      %20 = tpu.matmul %18, %19, %cst_16 {dimension_numbers = #tpu.dot_dimension_numbers<[1], [0], [0], [1], [0, 0, 1, 1], [], []>} : vector<8x512xbf16>, vector<512x128xbf16>, vector<8x128xf32> -> vector<8x128xf32>
      %c0_17 = arith.constant 0 : index
      %c0_18 = arith.constant 0 : index
      %21 = vector.load %arg5[%c0_17, %c0_18] : memref<1x128xf32, #tpu.memory_space<vmem>>, vector<1x128xf32>
      %22 = vector.broadcast %21 : vector<1x128xf32> to vector<8x128xf32>
      %23 = arith.addf %20, %22 : vector<8x128xf32>
      %c0_19 = arith.constant 0 : index
      %c0_20 = arith.constant 0 : index
      %24 = vector.load %arg6[%c0_19, %c0_20] : memref<8x128xf32, #tpu.memory_space<vmem>>, vector<8x128xf32>
      tpu.vector_store %arg6[%c0_19, %c0_20], %23 {strides = array<i32>} : memref<8x128xf32, #tpu.memory_space<vmem>>, vector<8x128xf32>,
    } else {
    }
    return
  }
  func.func @transform_0(%arg0: i32) -> (i32, i32) {
    %c0_i32 = arith.constant 0 : i32
    %c0_i32_0 = arith.constant 0 : i32
    return %c0_i32, %arg0 : i32, i32
  }
  func.func @transform_1(%arg0: i32) -> (i32, i32) {
    %c0_i32 = arith.constant 0 : i32
    %c0_i32_0 = arith.constant 0 : i32
    return %arg0, %c0_i32 : i32, i32
  }
  func.func @transform_2(%arg0: i32) -> (i32, i32) {
    %c0_i32 = arith.constant 0 : i32
    %c0_i32_0 = arith.constant 0 : i32
    %c0_i32_1 = arith.constant 0 : i32
    return %c0_i32, %c0_i32_0 : i32, i32
  }
  func.func @transform_3(%arg0: i32) -> (i32, i32) {
    %c0_i32 = arith.constant 0 : i32
    %c0_i32_0 = arith.constant 0 : i32
    %c0_i32_1 = arith.constant 0 : i32
    return %c0_i32, %c0_i32_0 : i32, i32
  }
  func.func @transform_4(%arg0: i32) -> (i32, i32) {
    %c0_i32 = arith.constant 0 : i32
    %c0_i32_0 = arith.constant 0 : i32
    %c0_i32_1 = arith.constant 0 : i32
    return %c0_i32, %c0_i32_0 : i32, i32
  }
  func.func @transform_5(%arg0: i32) -> (i32, i32) {
    %c0_i32 = arith.constant 0 : i32
    %c0_i32_0 = arith.constant 0 : i32
    %c0_i32_1 = arith.constant 0 : i32
    return %c0_i32, %c0_i32_0 : i32, i32
  }
}

</mosaic_0001>

<bundles_post_ra>
// kernel: tpu_custom_call.1
= control target key start
LH: loop header
LB: loop body
LE: loop exit
PB: predicated region body
PF: predicated region fallthrough
CT: control target
= control target key end

     0   :  { %10 = vsyncpa [#allocation4], 0  ;;  %s2106_s0 = inlined_call_operand.hbm [shape: bf16[8,1024], index: 0, kind: input, shape index: {}]   ;;  %s2107_s1 = inlined_call_operand.hbm [shape: bf16[1024,512], index: 1, kind: input, shape index: {}]   ;;  %s2108_s2 = inlined_call_operand.vmem [shape: f32[1,512], index: 2, kind: input, shape index: {}]   ;;  %s2109_s3 = inlined_call_operand.hbm [shape: bf16[512,128], index: 3, kind: input, shape index: {}]   ;;  %s2110_s4 = inlined_call_operand.vmem [shape: f32[1,128], index: 4, kind: input, shape index: {}]   ;;  %s2111_s5 = inlined_call_operand.hbm [shape: f32[8,128], index: 5, kind: output, shape index: {}]  }
   0x1   :  { %12 = vsyncpa [#allocation4 + $0x1], 0 }
   0x2   :  { %13 = vsyncpa [#allocation7], 0 }
   0x3   :  { %15 = vsyncpa [#allocation7 + $0x1], 0 }
   0x4   :  { %16 = vsyncpa [#allocation5], 0  ;;  %s1821_s18 = smov 0   ;;  %s1823_s19 = smov 0  }
   0x5   :  { %s1825_s20 = smov 0   ;;  %s1827_s21 = smov 0  }
   0x6 LB: > { %s1840_s22 = sadd.s32 4294967295, %s1780_s21   ;;  %p42_p0 = scmp.ne.s32.totalorder %s1772_s19, %s1768_s18  ;;  %s1780_s21 = sphi %s1827_s21, %s2128_s21   ;;  %s1776_s20 = sphi %s1825_s20, %s2127_s20   ;;  %s1772_s19 = sphi %s1823_s19, %s2126_s19   ;;  %s1768_s18 = sphi %s1821_s18, %s2125_s18  }
   0x7   : > { %p2112_p1 = scmp.eq.s32.totalorder %s1840_s22, 0  ;;  %p1257_p2 = scmp.ge.s32.totalorder %s1780_s21, 1 }
   0x8   : > { %p163_p3 = scmp.lt.s32.totalorder %s1780_s21, 5  ;;  %s1782_s25 = smov [#allocation8]  }
   0x9   : > { %p1849_p5 = por %p2112_p1, %p42_p0  ;;  %s178_s26 = sshll.u32 %s1782_s25, 4  ;;  %s179_s26 = int_to_ptr.vmem [resolvable:$true] %s178_s26 }
   0xa   : > { %p1853_p6 = pnand %p1257_p2, %p163_p3  ;;  %s1866_s28 = sadd.s32 1, %s1780_s21  }
   0xb   : > { %s2115_s23 = scalar_select %p1849_p5, 1, 0 }
   0xc   : > { %s2116_s24 = scalar_select %p1853_p6, 1, 0 }
   0xd   : > { %p1435_p7 = pneg %p1853_p6  ;;  %s29_s29 = sadd.s32 1, %s1776_s20 }
   0xe   : > { %s26_s30 = ssub.s32 %s1780_s21, %s1866_s28  ;;  %s1620_s8 = scalar_lea.hbm %s2109_s3, 4096 }
   0xf   : > { %p1861_p8 = pnand %p1435_p7, %p2112_p1  ;;  %p1621_p9 = scmp.ne.s32.totalorder %s2109_s3, %s1620_s8 }
  0x10   : > { %p1627_p13 = scmp.lt.u32.totalorder %s1620_s8, %s2109_s3 }
  0x11   : > { %p1622_p10 = pneg %p1861_p8 }
  0x13   : > { %p1623_p11 = pnand %p1622_p10, %p1621_p9 }
  0x15   : > { %p1624_p12 = pneg %p1623_p11 }
  0x17   : > { %p1629_p0 = pnand %p1627_p13, %p1624_p12 }
  0x19   : > { %1632 = shalt.err (!%p1629_p0)
}
  0x1a   : > { %s1633_s13 = scalar_lea.vmem %s179_s26, 4096  ;;  %p1641_p4 = scmp.lt.s32.totalorder %s179_s26, %s179_s26 }
  0x1b   : > { %p1634_p2 = scmp.ne.s32.totalorder %s179_s26, %s1633_s13  ;;  %p1642_p1 = scmp.lt.s32.totalorder %s1633_s13, %s1633_s13 }
  0x1d   : > { %p1636_p3 = pnand %p1634_p2, %p1622_p10  ;;  %p1643_p5 = por %p1642_p1, %p1641_p4 }
  0x1f   : > { %p1637_p7 = pneg %p1636_p3 }
  0x21   : > { %p1644_p6 = pnand %p1643_p5, %p1637_p7 }
  0x23   : > { %1647 = shalt.err (!%p1644_p6)
}
  0x24   : > { %s1783_s14 = smov 64   ;;  %s1784_s15 = smov 4  }
  0x25   : > { %1438 = dma.hbm_to_vmem [thread:$0]  (!%p1861_p8), %s2109_s3, 4096, %s179_s26, [#allocation7], %s1783_s14, %s1783_s14, %s1784_s15  }
  0x26   : > { %p27_p9 = scmp.eq.s32.totalorder %s26_s30, 0  ;;  %p36_p1 = scmp.ne.s32.totalorder %s1776_s20, %s1772_s19 }
  0x27   : > { %p37_p4 = scmp.eq.s32.totalorder %s1780_s21, 0  ;;  %p1447_p5 = scmp.lt.s32.totalorder %s1780_s21, 4 }
  0x28   : > { %s1892_s18 = scalar_select %p27_p9, %s1776_s20, %s29_s29  }
  0x29   : > { %p38_p6 = por %p37_p4, %p36_p1  ;;  %s1895_s25 = sand.u32 1, %s1776_s20  }
  0x2a   : > { %s1260_s6 = sshll.u32 %s1895_s25, 3  ;;  %s1376_s7 = sshll.u32 %s1780_s21, 7 }
  0x2b   : > { %s1902_s9 = scalar_lea.hbm %s2106_s0, %s1376_s7  ;;  %s199_s26 = scalar_lea.vmem [#allocation3], %s1260_s6 }
  0x2c   : > { %s207_s29 = sshll.u32 %s199_s26, 4  ;;  %p1906_p8 = pnand %p1447_p5, %p38_p6  ;;  %s1904_s29 = int_to_ptr.vmem [resolvable:$true] %s207_s29 }
  0x2d   : > { %s1263_s10 = sshll.u32 %s1895_s25, 9  ;;  %s214_s11 = sand.u32 1, %s1780_s21  }
  0x2e   : > { %s196_s12 = scalar_lea.sflag [#allocation4], %s1895_s25  ;;  %s1648_s13 = scalar_lea.hbm %s1902_s9, 128 }
  0x2f   : > { %p1649_p10 = scmp.ne.s32.totalorder %s1902_s9, %s1648_s13  ;;  %p1650_p11 = pneg %p1906_p8 }
  0x30   : > { %s1653_s16 = scalar_lea.hbm %s2106_s0, 512  ;;  %p1654_p0 = scmp.lt.u32.totalorder %s1902_s9, %s2106_s0 }
  0x31   : > { %p1651_p12 = pnand %p1650_p11, %p1649_p10  ;;  %p1655_p2 = scmp.lt.u32.totalorder %s1653_s16, %s1648_s13 }
  0x32   : > { %p1657_p7 = scmp.lt.u32.totalorder %s1648_s13, %s1902_s9 }
  0x33   : > { %p1652_p13 = pneg %p1651_p12  ;;  %p1656_p3 = por %p1655_p2, %p1654_p0 }
  0x35   : > { %p1658_p9 = por %p1657_p7, %p1656_p3 }
  0x37   : > { %p1659_p1 = pnand %p1658_p9, %p1652_p13 }
  0x39   : > { %1662 = shalt.err (!%p1659_p1)
}
  0x3a   : > { %s1663_s7 = scalar_lea.vmem %s1904_s29, 128  ;;  %s1785_s27 = smov [#allocation3]  }
  0x3b   : > { %p1664_p4 = scmp.ne.s32.totalorder %s1904_s29, %s1663_s7  ;;  %s1668_s8 = sshll.u32 %s1785_s27, 4  ;;  %s1669_s8 = int_to_ptr.vmem [resolvable:$false] %s1668_s8 }
  0x3c   : > { %s1670_s26 = scalar_lea.vmem %s1669_s8, 256  ;;  %p1671_p10 = scmp.lt.s32.totalorder %s1904_s29, %s1669_s8 }
  0x3d   : > { %p1666_p5 = pnand %p1664_p4, %p1650_p11  ;;  %p1672_p12 = scmp.lt.s32.totalorder %s1670_s26, %s1663_s7 }
  0x3f   : > { %p1667_p6 = pneg %p1666_p5  ;;  %p1673_p0 = por %p1672_p12, %p1671_p10 }
  0x41   : > { %p1674_p2 = pnand %p1673_p0, %p1667_p6 }
  0x43   : > { %1677 = shalt.err (!%p1674_p2)
}
  0x44   : > { %1442 = dma.hbm_to_vmem [thread:$0]  (!%p1906_p8), %s1902_s9, 128, %s1904_s29, %s196_s12  }
  0x45   : > { %s218_s13 = scalar_lea.vmem [#allocation6], %s1263_s10  ;;  %s1378_s15 = sshll.u32 %s1780_s21, 13 }
  0x46   : > { %s226_s14 = sshll.u32 %s218_s13, 4  ;;  %s1946_s6 = scalar_lea.hbm %s2107_s1, %s1378_s15  ;;  %s1940_s14 = int_to_ptr.vmem [resolvable:$true] %s226_s14 }
  0x47   : > { %s1950_s7 = scalar_lea.sflag [#allocation7], %s214_s11  ;;  %s1678_s27 = scalar_lea.hbm %s1946_s6, 8192 }
  0x48   : > { %p1679_p13 = scmp.ne.s32.totalorder %s1946_s6, %s1678_s27  ;;  %s1683_s29 = scalar_lea.hbm %s2107_s1, 32768 }
  0x49   : > { %p1684_p9 = scmp.lt.u32.totalorder %s1946_s6, %s2107_s1  ;;  %p1685_p1 = scmp.lt.u32.totalorder %s1683_s29, %s1678_s27 }
  0x4a   : > { %p1681_p3 = pnand %p1679_p13, %p1650_p11  ;;  %p1687_p5 = scmp.lt.u32.totalorder %s1678_s27, %s1946_s6 }
  0x4b   : > { %p1686_p4 = por %p1685_p1, %p1684_p9 }
  0x4c   : > { %p1682_p7 = pneg %p1681_p3 }
  0x4d   : > { %p1688_p6 = por %p1687_p5, %p1686_p4 }
  0x4f   : > { %p1689_p10 = pnand %p1688_p6, %p1682_p7 }
  0x51   : > { %1692 = shalt.err (!%p1689_p10)
}
  0x52   : > { %s1693_s21 = scalar_lea.vmem %s1940_s14, 8192  ;;  %s1786_s11 = smov [#allocation6]  }
  0x53   : > { %p1694_p12 = scmp.ne.s32.totalorder %s1940_s14, %s1693_s21  ;;  %s1698_s8 = sshll.u32 %s1786_s11, 4  ;;  %s1699_s8 = int_to_ptr.vmem [resolvable:$false] %s1698_s8 }
  0x54   : > { %s1700_s26 = scalar_lea.vmem %s1699_s8, 16384  ;;  %p1701_p13 = scmp.lt.s32.totalorder %s1940_s14, %s1699_s8 }
  0x55   : > { %p1696_p0 = pnand %p1694_p12, %p1650_p11  ;;  %p1702_p3 = scmp.lt.s32.totalorder %s1700_s26, %s1693_s21 }
  0x57   : > { %p1697_p2 = pneg %p1696_p0  ;;  %p1703_p9 = por %p1702_p3, %p1701_p13 }
  0x59   : > { %p1704_p1 = pnand %p1703_p9, %p1697_p2 }
  0x5b   : > { %1707 = shalt.err (!%p1704_p1)
}
  0x5c   : > { %s1787_s13 = smov 256   ;;  %s1788_s15 = smov 16  }
  0x5d   : > { %1445 = dma.hbm_to_vmem [thread:$0]  (!%p1906_p8), %s1946_s6, 8192, %s1940_s14, %s1950_s7, %s1787_s13, %s1787_s13, %s1788_s15  }
  0x5e   : > { %p2119_p11 = scmp.ne.s32.totalorder %s2116_s24, 0 }
  0x5f   : > { %s240_s16 = sand.u32 (!%p2119_p11), 1, %s1772_s19   ;;  %p2120_p7 = scmp.ne.s32.totalorder (!%p2119_p11), %s2115_s23, 0 }
  0x60   : > { %238 = sbr.rel (%p2119_p11) target bundleno = 659 (0x293), region = 40  ;;  %s1268_s17 = sshll.u32 (!%p2119_p11), %s240_s16, 3 }
  0x61   : > { %s241_s27 = scalar_lea.sflag (!%p2119_p11), [#allocation4], %s240_s16  ;;  %s1979_s25 = scalar_lea.vmem (!%p2119_p11), [#allocation3], %s1268_s17 }
  0x67   : > { %1751 = dma.done.wait (%p2120_p7), %s241_s27, 128  }
  0x68   : > { %1753 = vsyncadd (%p2120_p7), %s241_s27, 4294967168  ;;  %s249_s9 = sand.u32 1, %s1840_s22   ;;  %s1269_s30 = sshll.u32 %s240_s16, 9 }
  0x69   : > { %s250_s14 = scalar_lea.sflag [#allocation7], %s249_s9  ;;  %s1986_s6 = scalar_lea.vmem [#allocation6], %s1269_s30 }
  0x6a   : > { %1755 = dma.done.wait (%p2120_p7), %s250_s14, 8192  }
  0x6b   : > { %1757 = vsyncadd (%p2120_p7), %s250_s14, 4294959104  ;;  %p2121_p8 = scmp.eq.s32.totalorder %s1840_s22, 0 }
  0x6d   : > { %1759 = dma.done.wait (%p2121_p8), [#allocation7], 4096   ;;  %p2122_p4 = pmov %p2121_p8 }
  0x6e   : > { %p2123_p5 = scmp.ne.s32.totalorder %s1840_s22, 0 }
  0x6f   : > { %1761 = vsyncadd (%p2122_p4), [#allocation7], 4294963200  ;;  %v1789_v0 = vmov (!%p2123_p5), 0.0  }
  0x70   : > { %290 = sbr.rel (%p2123_p5) target bundleno = 119 (0x77), region = 56  ;;  %291 = vst [vmem:[#allocation2] sm:$0xff] (!%p2123_p5), %v1789_v0  ;;  %292 = vst [vmem:[#allocation2 + $0x8] sm:$0xff] (!%p2123_p5), %v1789_v0 }
  0x71   : > { %293 = vst [vmem:[#allocation2 + $0x10] sm:$0xff] (!%p2123_p5), %v1789_v0  ;;  %294 = vst [vmem:[#allocation2 + $0x18] sm:$0xff] (!%p2123_p5), %v1789_v0 }
  0x77 PF: > { %v1490_v1 = vld [vmem:[%s1986_s6 + $0x4] ss:$16 sps:$4 sm:$0xff]   ;;  %v1492_v2 = vld [vmem:[%s1986_s6 + $0xc] ss:$16 sps:$4 sm:$0xff]   ;;  %v1494_v3 = vld [vmem:[%s1986_s6] ss:$16 sps:$4 sm:$0xff]  }
  0x78   : > { %691 = vmatprep.subr.bf16.mxu0 %v1490_v1  ;;  %v1495_v4 = vld [vmem:[%s1986_s6 + $0x8] ss:$16 sps:$4 sm:$0xff]   ;;  %732 = vmatprep.subr.bf16.mxu1 %v1492_v2  ;;  %v1496_v5 = vld [vmem:[%s1986_s6 + $0x24] ss:$16 sps:$4 sm:$0xff]   ;;  %v1498_v6 = vld [vmem:[%s1986_s6 + $0x2c] ss:$16 sps:$4 sm:$0xff]  }
  0x79   : > { %692 = vmatpush1.bf16.msra.mxu0 %v1494_v3  ;;  %733 = vmatpush1.bf16.msra.mxu1 %v1495_v4  ;;  %v1500_v7 = vld [vmem:[%s1986_s6 + $0x20] ss:$16 sps:$4 sm:$0xff]   ;;  %v1501_v8 = vld [vmem:[%s1986_s6 + $0x28] ss:$16 sps:$4 sm:$0xff]   ;;  %v1502_v9 = vld [vmem:[%s1986_s6 + $0x44] ss:$16 sps:$4 sm:$0xff]  }
  0x7a   : > { %693 = vmatprep.subr.bf16.mxu0 %v1496_v5  ;;  %734 = vmatprep.subr.bf16.mxu1 %v1498_v6  ;;  %v1504_v10 = vld [vmem:[%s1986_s6 + $0x4c] ss:$16 sps:$4 sm:$0xff]   ;;  %v1506_v11 = vld [vmem:[%s1986_s6 + $0x40] ss:$16 sps:$4 sm:$0xff]   ;;  %v1507_v12 = vld [vmem:[%s1986_s6 + $0x48] ss:$16 sps:$4 sm:$0xff]  }
  0x7b   : > { %v1508_v13 = vld [vmem:[%s1986_s6 + $0x64] ss:$16 sps:$4 sm:$0xff]   ;;  %v1510_v14 = vld [vmem:[%s1986_s6 + $0x6c] ss:$16 sps:$4 sm:$0xff]   ;;  %v1512_v15 = vld [vmem:[%s1986_s6 + $0x60] ss:$16 sps:$4 sm:$0xff]  }
  0x7c   : > { %v1513_v16 = vld [vmem:[%s1986_s6 + $0x68] ss:$16 sps:$4 sm:$0xff]   ;;  %v1514_v17 = vld [vmem:[%s1986_s6 + $0x84] ss:$16 sps:$4 sm:$0xff]   ;;  %v1516_v18 = vld [vmem:[%s1986_s6 + $0x8c] ss:$16 sps:$4 sm:$0xff]  }
  0x7d   : > { %694 = vmatpush1.bf16.msra.mxu0 %v1500_v7  ;;  %735 = vmatpush1.bf16.msra.mxu1 %v1501_v8  ;;  %v1518_v19 = vld [vmem:[%s1986_s6 + $0x80] ss:$16 sps:$4 sm:$0xff]   ;;  %v1519_v20 = vld [vmem:[%s1986_s6 + $0x88] ss:$16 sps:$4 sm:$0xff]   ;;  %v1520_v21 = vld [vmem:[%s1986_s6 + $0xa4] ss:$16 sps:$4 sm:$0xff]  }
  0x7e   : > { %695 = vmatprep.subr.bf16.mxu0 %v1502_v9  ;;  %736 = vmatprep.subr.bf16.mxu1 %v1504_v10  ;;  %v1522_v22 = vld [vmem:[%s1986_s6 + $0xac] ss:$16 sps:$4 sm:$0xff]   ;;  %v1524_v23 = vld [vmem:[%s1986_s6 + $0xa0] ss:$16 sps:$4 sm:$0xff]   ;;  %v1525_v24 = vld [vmem:[%s1986_s6 + $0xa8] ss:$16 sps:$4 sm:$0xff]  }
  0x7f   : > { %v1526_v25 = vld [vmem:[%s1986_s6 + $0xc4] ss:$16 sps:$4 sm:$0xff]   ;;  %v1528_v26 = vld [vmem:[%s1986_s6 + $0xcc] ss:$16 sps:$4 sm:$0xff]   ;;  %v1530_v27 = vld [vmem:[%s1986_s6 + $0xc0] ss:$16 sps:$4 sm:$0xff]  }
  0x80   : > { %v1531_v28 = vld [vmem:[%s1986_s6 + $0xc8] ss:$16 sps:$4 sm:$0xff]   ;;  %v1532_v29 = vld [vmem:[%s1986_s6 + $0xe4] ss:$16 sps:$4 sm:$0xff]   ;;  %v1534_v30 = vld [vmem:[%s1986_s6 + $0xec] ss:$16 sps:$4 sm:$0xff]  }
  0x81   : > { %696 = vmatpush1.bf16.msra.mxu0 %v1506_v11  ;;  %737 = vmatpush1.bf16.msra.mxu1 %v1507_v12  ;;  %v1536_v31 = vld [vmem:[%s1986_s6 + $0xe0] ss:$16 sps:$4 sm:$0xff]   ;;  %v1537_v32 = vld [vmem:[%s1986_s6 + $0xe8] ss:$16 sps:$4 sm:$0xff]   ;;  %v1538_v33 = vld [vmem:[%s1986_s6 + $0x104] ss:$16 sps:$4 sm:$0xff]  }
  0x82   : > { %697 = vmatprep.subr.bf16.mxu0 %v1508_v13  ;;  %738 = vmatprep.subr.bf16.mxu1 %v1510_v14  ;;  %v1540_v34 = vld [vmem:[%s1986_s6 + $0x10c] ss:$16 sps:$4 sm:$0xff]   ;;  %v1542_v35 = vld [vmem:[%s1986_s6 + $0x100] ss:$16 sps:$4 sm:$0xff]   ;;  %v1543_v36 = vld [vmem:[%s1986_s6 + $0x108] ss:$16 sps:$4 sm:$0xff]  }
  0x83   : > { %v1544_v37 = vld [vmem:[%s1986_s6 + $0x124] ss:$16 sps:$4 sm:$0xff]   ;;  %v1546_v38 = vld [vmem:[%s1986_s6 + $0x12c] ss:$16 sps:$4 sm:$0xff]   ;;  %v1548_v39 = vld [vmem:[%s1986_s6 + $0x120] ss:$16 sps:$4 sm:$0xff]  }
  0x84   : > { %v1549_v40 = vld [vmem:[%s1986_s6 + $0x128] ss:$16 sps:$4 sm:$0xff]   ;;  %v1550_v41 = vld [vmem:[%s1986_s6 + $0x144] ss:$16 sps:$4 sm:$0xff]   ;;  %v1552_v42 = vld [vmem:[%s1986_s6 + $0x14c] ss:$16 sps:$4 sm:$0xff]  }
  0x85   : > { %698 = vmatpush1.bf16.msra.mxu0 %v1512_v15  ;;  %739 = vmatpush1.bf16.msra.mxu1 %v1513_v16  ;;  %v1554_v43 = vld [vmem:[%s1986_s6 + $0x140] ss:$16 sps:$4 sm:$0xff]   ;;  %v1555_v44 = vld [vmem:[%s1986_s6 + $0x148] ss:$16 sps:$4 sm:$0xff]   ;;  %v1556_v45 = vld [vmem:[%s1986_s6 + $0x164] ss:$16 sps:$4 sm:$0xff]  }
  0x86   : > { %699 = vmatprep.subr.bf16.mxu0 %v1514_v17  ;;  %740 = vmatprep.subr.bf16.mxu1 %v1516_v18  ;;  %v1558_v46 = vld [vmem:[%s1986_s6 + $0x16c] ss:$16 sps:$4 sm:$0xff]   ;;  %v1560_v49 = vld [vmem:[%s1986_s6 + $0x160] ss:$16 sps:$4 sm:$0xff]   ;;  %v1561_v50 = vld [vmem:[%s1986_s6 + $0x168] ss:$16 sps:$4 sm:$0xff]  }
  0x87   : > { %v299_v47 = vld [vmem:[%s1979_s25] sm:$0xff]  ;;  %v297_v5 = vld [vmem:[#allocation2 + $0x10] sm:$0xff]  ;;  %v298_v7 = vld [vmem:[#allocation2 + $0x18] sm:$0xff]  ;;  %p1338_p6 = scmp.ne.s32.totalorder %s1840_s22, 3 }
  0x88   : > { %v1273_v48 = vcombine.high %v299_v47, %v299_v47  ;;  %v1562_v51 = vld [vmem:[%s1986_s6 + $0x184] ss:$16 sps:$4 sm:$0xff]   ;;  %v1564_v52 = vld [vmem:[%s1986_s6 + $0x18c] ss:$16 sps:$4 sm:$0xff]   ;;  %v1566_v53 = vld [vmem:[%s1986_s6 + $0x180] ss:$16 sps:$4 sm:$0xff]   ;;  %v1272_v3 = vcombine.low %v299_v47, %v299_v47 }
  0x89   : > { %700 = vmatpush1.bf16.msra.mxu0 %v1518_v19  ;;  %741 = vmatpush1.bf16.msra.mxu1 %v1519_v20  ;;  %v1567_v54 = vld [vmem:[%s1986_s6 + $0x188] ss:$16 sps:$4 sm:$0xff]   ;;  %v1568_v55 = vld [vmem:[%s1986_s6 + $0x1a4] ss:$16 sps:$4 sm:$0xff]   ;;  %v1570_v56 = vld [vmem:[%s1986_s6 + $0x1ac] ss:$16 sps:$4 sm:$0xff]  }
  0x8a   : > { %701 = vmatprep.subr.bf16.mxu0 %v1520_v21  ;;  %742 = vmatprep.subr.bf16.mxu1 %v1522_v22  ;;  %v1572_v57 = vld [vmem:[%s1986_s6 + $0x1a0] ss:$16 sps:$4 sm:$0xff]   ;;  %v1573_v58 = vld [vmem:[%s1986_s6 + $0x1a8] ss:$16 sps:$4 sm:$0xff]   ;;  %v1574_v59 = vld [vmem:[%s1986_s6 + $0x1c4] ss:$16 sps:$4 sm:$0xff]  }
  0x8b   : > { %723 = vmatprep.mubr.bf16.mxu0 %v1273_v48  ;;  %764 = vmatprep.mubr.bf16.mxu1 %v1273_v48  ;;  %v1576_v60 = vld [vmem:[%s1986_s6 + $0x1cc] ss:$16 sps:$4 sm:$0xff]   ;;  %v1578_v61 = vld [vmem:[%s1986_s6 + $0x1c0] ss:$16 sps:$4 sm:$0xff]   ;;  %v1579_v62 = vld [vmem:[%s1986_s6 + $0x1c8] ss:$16 sps:$4 sm:$0xff]  }
  0x8c   : > { %v1580_v63 = vld [vmem:[%s1986_s6 + $0x1e4] ss:$16 sps:$4 sm:$0xff]   ;;  %v1582_v0 = vld [vmem:[%s1986_s6 + $0x1ec] ss:$16 sps:$4 sm:$0xff]   ;;  %v1584_v1 = vld [vmem:[%s1986_s6 + $0x1e0] ss:$16 sps:$4 sm:$0xff]  }
  0x8d   : > { %702 = vmatpush1.bf16.msra.mxu0 %v1524_v23  ;;  %743 = vmatpush1.bf16.msra.mxu1 %v1525_v24  ;;  %v1585_v2 = vld [vmem:[%s1986_s6 + $0x1e8] ss:$16 sps:$4 sm:$0xff]   ;;  %v295_v4 = vld [vmem:[#allocation2] sm:$0xff]  ;;  %v1588_v20 = vld [vmem:[#allocation8 + $0x40] sm:$0xff] (!%p1338_p6)  }
  0x8e   : > { %703 = vmatprep.subr.bf16.mxu0 %v1526_v25  ;;  %744 = vmatprep.subr.bf16.mxu1 %v1528_v26  ;;  %v296_v6 = vld [vmem:[#allocation2 + $0x8] sm:$0xff]  ;;  %v1589_v21 = vld [vmem:[#allocation8 + $0xc0] sm:$0xff] (!%p1338_p6)   ;;  %v1592_v24 = vld [vmem:[#allocation8 + $0x48] sm:$0xff] (!%p1338_p6)  }
  0x8f   : > { %v1590_v22 = vld [vmem:[#allocation8] sm:$0xff] (!%p1338_p6)   ;;  %v1593_v25 = vld [vmem:[#allocation8 + $0xc8] sm:$0xff] (!%p1338_p6)   ;;  %v1613_v47 = vld [vmem:[#allocation8 + $0xf0] sm:$0xff] (!%p1338_p6)  }
  0x90   : > { %v1591_v23 = vld [vmem:[#allocation8 + $0x80] sm:$0xff] (!%p1338_p6)   ;;  %v1594_v26 = vld [vmem:[#allocation8 + $0x8] sm:$0xff] (!%p1338_p6)   ;;  %v1614_v48 = vld [vmem:[#allocation8 + $0x30] sm:$0xff] (!%p1338_p6)  }
  0x91   : > { %704 = vmatpush1.bf16.msra.mxu0 %v1530_v27  ;;  %745 = vmatpush1.bf16.msra.mxu1 %v1531_v28  ;;  %v1595_v27 = vld [vmem:[#allocation8 + $0x88] sm:$0xff] (!%p1338_p6)   ;;  %v1596_v28 = vld [vmem:[#allocation8 + $0x50] sm:$0xff] (!%p1338_p6)  }
  0x92   : > { %705 = vmatprep.subr.bf16.mxu0 %v1532_v29  ;;  %746 = vmatprep.subr.bf16.mxu1 %v1534_v30  ;;  %v1597_v29 = vld [vmem:[#allocation8 + $0xd0] sm:$0xff] (!%p1338_p6)  }
  0x93   : > { %v1598_v30 = vld [vmem:[#allocation8 + $0x10] sm:$0xff] (!%p1338_p6)  }
  0x95   : > { %706 = vmatpush1.bf16.msra.mxu0 %v1536_v31  ;;  %747 = vmatpush1.bf16.msra.mxu1 %v1537_v32  ;;  %v1599_v31 = vld [vmem:[#allocation8 + $0x90] sm:$0xff] (!%p1338_p6)   ;;  %v1600_v32 = vld [vmem:[#allocation8 + $0x58] sm:$0xff] (!%p1338_p6)  }
  0x96   : > { %707 = vmatprep.subr.bf16.mxu0 %v1538_v33  ;;  %748 = vmatprep.subr.bf16.mxu1 %v1540_v34  ;;  %v1601_v33 = vld [vmem:[#allocation8 + $0xd8] sm:$0xff] (!%p1338_p6)  }
  0x97   : > { %v1602_v34 = vld [vmem:[#allocation8 + $0x18] sm:$0xff] (!%p1338_p6)  }
  0x99   : > { %708 = vmatpush1.bf16.msra.mxu0 %v1542_v35  ;;  %749 = vmatpush1.bf16.msra.mxu1 %v1543_v36  ;;  %v1603_v35 = vld [vmem:[#allocation8 + $0x98] sm:$0xff] (!%p1338_p6)   ;;  %v1604_v36 = vld [vmem:[#allocation8 + $0x60] sm:$0xff] (!%p1338_p6)  }
  0x9a   : > { %709 = vmatprep.subr.bf16.mxu0 %v1544_v37  ;;  %750 = vmatprep.subr.bf16.mxu1 %v1546_v38  ;;  %v1605_v37 = vld [vmem:[#allocation8 + $0xe0] sm:$0xff] (!%p1338_p6)  }
  0x9b   : > { %v1606_v38 = vld [vmem:[#allocation8 + $0x20] sm:$0xff] (!%p1338_p6)  }
  0x9d   : > { %710 = vmatpush1.bf16.msra.mxu0 %v1548_v39  ;;  %751 = vmatpush1.bf16.msra.mxu1 %v1549_v40  ;;  %v791_v39 = vlaneseq (!%p1338_p6)  ;;  %v1607_v40 = vld [vmem:[#allocation8 + $0xa0] sm:$0xff] (!%p1338_p6)  }
  0x9e   : > { %711 = vmatprep.subr.bf16.mxu0 %v1550_v41  ;;  %752 = vmatprep.subr.bf16.mxu1 %v1552_v42  ;;  %v1608_v41 = vld [vmem:[#allocation8 + $0x68] sm:$0xff] (!%p1338_p6)  }
  0x9f   : > { %v1609_v42 = vld [vmem:[#allocation8 + $0xe8] sm:$0xff] (!%p1338_p6)  }
  0xa1   : > { %712 = vmatpush1.bf16.msra.mxu0 %v1554_v43  ;;  %753 = vmatpush1.bf16.msra.mxu1 %v1555_v44  ;;  %v1610_v43 = vld [vmem:[#allocation8 + $0x28] sm:$0xff] (!%p1338_p6)   ;;  %v792_v44 = vshrl.u32 (!%p1338_p6), %v791_v39, 7 }
  0xa2   : > { %713 = vmatprep.subr.bf16.mxu0 %v1556_v45  ;;  %754 = vmatprep.subr.bf16.mxu1 %v1558_v46  ;;  %v1611_v45 = vld [vmem:[#allocation8 + $0xa8] sm:$0xff] (!%p1338_p6)   ;;  %v1612_v46 = vld [vmem:[#allocation8 + $0x70] sm:$0xff] (!%p1338_p6)  }
  0xa5   : > { %714 = vmatpush1.bf16.msra.mxu0 %v1560_v49  ;;  %755 = vmatpush1.bf16.msra.mxu1 %v1561_v50  ;;  %v797_v49 = vsub.s32 (!%p1338_p6), 1, %v792_v44  ;;  %v1615_v50 = vld [vmem:[#allocation8 + $0xb0] sm:$0xff] (!%p1338_p6)  }
  0xa6   : > { %715 = vmatprep.subr.bf16.mxu0 %v1562_v51  ;;  %756 = vmatprep.subr.bf16.mxu1 %v1564_v52  ;;  %v805_v51 = vsub.s32 (!%p1338_p6), 3, %v792_v44  ;;  %v1616_v52 = vld [vmem:[#allocation8 + $0x78] sm:$0xff] (!%p1338_p6)  }
  0xa9   : > { %716 = vmatpush1.bf16.msra.mxu0 %v1566_v53  ;;  %757 = vmatpush1.bf16.msra.mxu1 %v1567_v54  ;;  %v793_v53 = vsub.s32 (!%p1338_p6), 0, %v792_v44  ;;  %v1617_v54 = vld [vmem:[#allocation8 + $0xf8] sm:$0xff] (!%p1338_p6)  }
  0xaa   : > { %717 = vmatprep.subr.bf16.mxu0 %v1568_v55  ;;  %758 = vmatprep.subr.bf16.mxu1 %v1570_v56  ;;  %v801_v55 = vsub.s32 (!%p1338_p6), 2, %v792_v44  ;;  %v1618_v56 = vld [vmem:[#allocation8 + $0x38] sm:$0xff] (!%p1338_p6)  }
  0xad   : > { %718 = vmatpush1.bf16.msra.mxu0 %v1572_v57  ;;  %759 = vmatpush1.bf16.msra.mxu1 %v1573_v58  ;;  %v1619_v57 = vld [vmem:[#allocation8 + $0xb8] sm:$0xff] (!%p1338_p6)  }
  0xae   : > { %719 = vmatprep.subr.bf16.mxu0 %v1574_v59  ;;  %760 = vmatprep.subr.bf16.mxu1 %v1576_v60  ;;  %v789_v59 = vld [vmem:[%s2108_s2] sm:$0xf] (!%p1338_p6) }
  0xb1   : > { %720 = vmatpush1.bf16.msra.mxu0 %v1578_v61  ;;  %761 = vmatpush1.bf16.msra.mxu1 %v1579_v62  ;;  %v798_v61 = vrot.slane (!%p1338_p6), %v789_v59, %v797_v49  ;;  %v806_v62 = vrot.slane (!%p1338_p6), %v789_v59, %v805_v51 }
  0xb2   : > { %721 = vmatprep.subr.bf16.mxu0 %v1580_v63  ;;  %762 = vmatprep.subr.bf16.mxu1 %v1582_v0  ;;  %v794_v0 = vrot.slane (!%p1338_p6), %v789_v59, %v793_v53 }
  0xb5   : > { %722 = vmatpush1.bf16.msra.mxu0 %v1584_v1  ;;  %763 = vmatpush1.bf16.msra.mxu1 %v1585_v2  ;;  %v802_v2 = vrot.slane (!%p1338_p6), %v789_v59, %v801_v55 }
  0xb6   : > { %1379 = vmatprep.subr.bf16.mxu0 (!%p1338_p6), %v1588_v20  ;;  %1401 = vmatprep.subr.bf16.mxu1 (!%p1338_p6), %v1589_v21 }
  0xb8   : > { %724 = vmatmul.mubr.bf16.vlgmr.msra.gmra.mrb[0].mxu0 %v1272_v3  ;;  %765 = vmatmul.mubr.bf16.vlgmr.msra.gmra.mrb[0].mxu1 %v1272_v3 }
  0xb9   : > { %1380 = vmatpush3.bf16.msra.mxu0 (!%p1338_p6), %v1590_v22  ;;  %1402 = vmatpush3.bf16.msra.mxu1 (!%p1338_p6), %v1591_v23 }
  0xba   : > { %1381 = vmatprep.subr.bf16.mxu0 (!%p1338_p6), %v1592_v24  ;;  %1403 = vmatprep.subr.bf16.mxu1 (!%p1338_p6), %v1593_v25 }
  0xbd   : > { %1382 = vmatpush3.bf16.msra.mxu0 (!%p1338_p6), %v1594_v26  ;;  %1404 = vmatpush3.bf16.msra.mxu1 (!%p1338_p6), %v1595_v27 }
  0xbe   : > { %1383 = vmatprep.subr.bf16.mxu0 (!%p1338_p6), %v1596_v28  ;;  %1405 = vmatprep.subr.bf16.mxu1 (!%p1338_p6), %v1597_v29 }
  0xc1   : > { %1384 = vmatpush3.bf16.msra.mxu0 (!%p1338_p6), %v1598_v30  ;;  %1406 = vmatpush3.bf16.msra.mxu1 (!%p1338_p6), %v1599_v31 }
  0xc2   : > { %1385 = vmatprep.subr.bf16.mxu0 (!%p1338_p6), %v1600_v32  ;;  %1407 = vmatprep.subr.bf16.mxu1 (!%p1338_p6), %v1601_v33 }
  0xc5   : > { %1386 = vmatpush3.bf16.msra.mxu0 (!%p1338_p6), %v1602_v34  ;;  %1408 = vmatpush3.bf16.msra.mxu1 (!%p1338_p6), %v1603_v35 }
  0xc6   : > { %1387 = vmatprep.subr.bf16.mxu0 (!%p1338_p6), %v1604_v36  ;;  %1409 = vmatprep.subr.bf16.mxu1 (!%p1338_p6), %v1605_v37 }
  0xc9   : > { %1388 = vmatpush3.bf16.msra.mxu0 (!%p1338_p6), %v1606_v38  ;;  %1410 = vmatpush3.bf16.msra.mxu1 (!%p1338_p6), %v1607_v40 }
  0xca   : > { %1389 = vmatprep.subr.bf16.mxu0 (!%p1338_p6), %v1608_v41  ;;  %1411 = vmatprep.subr.bf16.mxu1 (!%p1338_p6), %v1609_v42 }
  0xcd   : > { %1390 = vmatpush3.bf16.msra.mxu0 (!%p1338_p6), %v1610_v43  ;;  %1412 = vmatpush3.bf16.msra.mxu1 (!%p1338_p6), %v1611_v45 }
  0xce   : > { %1391 = vmatprep.subr.bf16.mxu0 (!%p1338_p6), %v1612_v46  ;;  %1413 = vmatprep.subr.bf16.mxu1 (!%p1338_p6), %v1613_v47 }
  0xd1   : > { %1392 = vmatpush3.bf16.msra.mxu0 (!%p1338_p6), %v1614_v48  ;;  %1414 = vmatpush3.bf16.msra.mxu1 (!%p1338_p6), %v1615_v50 }
  0xd2   : > { %1393 = vmatprep.subr.bf16.mxu0 (!%p1338_p6), %v1616_v52  ;;  %1415 = vmatprep.subr.bf16.mxu1 (!%p1338_p6), %v1617_v54 }
  0xd5   : > { %1394 = vmatpush3.bf16.msra.mxu0 (!%p1338_p6), %v1618_v56  ;;  %1416 = vmatpush3.bf16.msra.mxu1 (!%p1338_p6), %v1619_v57 }
 0x189   : > { %784 = sbr.rel (%p1338_p6) target bundleno = 634 (0x27a), region = 60 }
 0x18b   : > { %v725_v8 = vpop.f32.mrb[0].mxu0  ;;  %v766_v9 = vpop.f32.mrb[0].mxu1 }
 0x18c   : > { %v773_v10 = vadd.f32 %v725_v8, %v295_v4  ;;  %v775_v11 = vadd.f32 %v766_v9, %v297_v5  ;;  %v727_v12 = vpop.f32.mrb[1].mxu0  ;;  %v768_v13 = vpop.f32.mrb[1].mxu1 }
 0x18d   : > { %v774_v14 = vadd.f32 %v727_v12, %v296_v6  ;;  %v776_v15 = vadd.f32 %v768_v13, %v298_v7  ;;  %v729_v16 = vpop.f32.mrb[2].mxu0  ;;  %v770_v17 = vpop.f32.mrb[2].mxu1 }
 0x18e   : > { %777 = vst [vmem:[#allocation2] sm:$0xff] %v773_v10  ;;  %779 = vst [vmem:[#allocation2 + $0x10] sm:$0xff] %v775_v11  ;;  %v730_v18 = vpop.f32.mrb[3].mxu0  ;;  %v771_v19 = vpop.f32.mrb[3].mxu1  ;;  %v1339_v17 = vld [vmem:[%s2110_s4] ss:$0 sm:$0xff] (!%p1338_p6) }
 0x18f   : > { %778 = vst [vmem:[#allocation2 + $0x8] sm:$0xff] %v774_v14  ;;  %780 = vst [vmem:[#allocation2 + $0x18] sm:$0xff] %v776_v15 }
 0x195   : > { %v785_v63 = vld [vmem:[#allocation2] sm:$0xff]  ;;  %v787_v1 = vld [vmem:[#allocation2 + $0x10] sm:$0xff] }
 0x196   : > { %v786_v58 = vld [vmem:[#allocation2 + $0x8] sm:$0xff]  ;;  %v788_v60 = vld [vmem:[#allocation2 + $0x18] sm:$0xff]  ;;  %v811_v5 = vadd.f32 %v794_v0, %v785_v63  ;;  %v813_v6 = vadd.f32 %v802_v2, %v787_v1 }
 0x197   : > { %v812_v3 = vadd.f32 %v798_v61, %v786_v58  ;;  %v814_v4 = vadd.f32 %v806_v62, %v788_v60 }
 0x198   : > { %v815_v9 = vmax.f32 %v811_v5, 0.0  ;;  %v817_v10 = vmax.f32 %v813_v6, 0.0 }
 0x199   : > { %v816_v7 = vmax.f32 %v812_v3, 0.0  ;;  %v818_v8 = vmax.f32 %v814_v4, 0.0 }
 0x19a   : > { %v819_v13 = vpack.c.bf16 %v815_v9, %v815_v9  ;;  %v821_v14 = vpack.c.bf16 %v817_v10, %v817_v10 }
 0x19b   : > { %v820_v11 = vpack.c.bf16 %v816_v7, %v816_v7  ;;  %v822_v12 = vpack.c.bf16 %v818_v8, %v818_v8 }
 0x19d   : > { %1118 = vmatprep.mubr.bf16.mxu0 %v820_v11  ;;  %1158 = vmatprep.mubr.bf16.mxu1 %v822_v12 }
 0x19e   : > { %1119 = vmatmul.mubr.bf16.vlgmr.msra.gmra.mrb[0].mxu0 %v819_v13  ;;  %1159 = vmatmul.mubr.bf16.vlgmr.msra.gmra.mrb[0].mxu1 %v821_v14 }
 0x271   : > { %v1395_v15 = vpop.f32.mrb[0].mxu0  ;;  %v1417_v16 = vpop.f32.mrb[0].mxu1 }
 0x272   : > { %v1396_v18 = vpop.f32.mrb[1].mxu0  ;;  %v1418_v19 = vpop.f32.mrb[1].mxu1 }
 0x273   : > { %v1397_v20 = vadd.f32 %v1396_v18, %v1395_v15  ;;  %v1419_v21 = vadd.f32 %v1418_v19, %v1417_v16  ;;  %v1398_v22 = vpop.f32.mrb[2].mxu0  ;;  %v1420_v23 = vpop.f32.mrb[2].mxu1 }
 0x274   : > { %v1399_v24 = vpop.f32.mrb[3].mxu0  ;;  %v1421_v25 = vpop.f32.mrb[3].mxu1 }
 0x275   : > { %v1121_v26 = vadd.f32 %v1397_v20, %v1339_v17 }
 0x277   : > { %v1161_v27 = vadd.f32 %v1419_v21, %v1121_v26 }
 0x279   : > { %1166 = vst [vmem:[#allocation9] sm:$0xff] %v1161_v27 }
 0x27a PF: > { %p1449_p10 = scmp.eq.s32.totalorder %s1840_s22, 3  ;;  %s1790_s10 = smov [#allocation9]  }
 0x27b   : > { %s1174_s12 = sshll.u32 %s1790_s10, 4  ;;  %s1175_s12 = int_to_ptr.vmem [resolvable:$true] %s1174_s12 }
 0x27c   : > { %s1708_s21 = scalar_lea.vmem %s1175_s12, 128  ;;  %p1715_p13 = scmp.lt.s32.totalorder %s1175_s12, %s1175_s12 }
 0x27d   : > { %p1709_p12 = scmp.ne.s32.totalorder %s1175_s12, %s1708_s21  ;;  %p1716_p3 = scmp.lt.s32.totalorder %s1708_s21, %s1708_s21 }
 0x27f   : > { %p1710_p0 = pnand %p1709_p12, %p1449_p10  ;;  %p1717_p9 = por %p1716_p3, %p1715_p13 }
 0x281   : > { %p1711_p2 = pneg %p1710_p0 }
 0x283   : > { %p1718_p1 = pnand %p1717_p9, %p1711_p2 }
 0x285   : > { %1721 = shalt.err (!%p1718_p1)
}
 0x286   : > { %s1722_s26 = scalar_lea.hbm %s2111_s5, 128 }
 0x287   : > { %p1723_p11 = scmp.ne.s32.totalorder %s2111_s5, %s1722_s26  ;;  %p1728_p4 = scmp.lt.u32.totalorder %s1722_s26, %s2111_s5 }
 0x289   : > { %p1724_p7 = pnand %p1723_p11, %p1449_p10 }
 0x28b   : > { %p1725_p8 = pneg %p1724_p7 }
 0x28d   : > { %p1730_p5 = pnand %p1728_p4, %p1725_p8 }
 0x28f   : > { %1733 = shalt.err (!%p1730_p5)
}
 0x290   : > { %1432 = dma.vmem_to_hbm [thread:$0]  (%p1449_p10), %s1175_s12, 128, %s2111_s5, [#allocation5]  }
 0x291   : > { %1763 = dma.done.wait (%p1449_p10), [#allocation5], 128  }
 0x292   : > { %1765 = vsyncadd (%p1449_p10), [#allocation5], 4294967168 }
 0x293 PF: > { %s2124_s9 = smov %s1892_s18  ;;  %p19_p6 = scmp.ge.s32.totalorder %s1866_s28, 6  }
 0x294   : > { %s2125_s18 = smov %s1772_s19  ;;  %s2126_s19 = smov %s1776_s20 }
 0x295   : > { %s2127_s20 = smov %s2124_s9  ;;  %s2128_s21 = smov %s1866_s28 }
 0x296   :  { %21 = sbr.rel (!%p19_p6) target bundleno = 6 (0x6), region = 102 }
 0x29d   :  { %1187 = vsyncpa [#allocation4], 1 }
 0x29e   :  { %1189 = vsyncpa [#allocation4 + $0x1], 1 }
 0x29f   :  { %1190 = vsyncpa [#allocation7], 1 }
 0x2a0   :  { %1192 = vsyncpa [#allocation7 + $0x1], 1 }
 0x2a1   :  { %1193 = vsyncpa [#allocation5], 1 }
 0x2a2   :  { %1195 = vsyncpa [#allocation5 + $0x1], 1 }

</bundles_post_ra>
